<compile_context>
chip_gen: v6e
topology: v6e:2x2x1
jax: 0.10.0
libtpu: 0.0.40
codegen_flags: <defaults>
</compile_context>

<pallas_src>
import functools

import jax
import jax.numpy as jnp
from jax import lax
from jax.experimental import pallas as pl
from jax.experimental.pallas import tpu as pltpu

# ----------------------------------------------------------------------------
# Deterministic "constraint parameters" (what __init__ would hold).
# ----------------------------------------------------------------------------
NUM_JOINTS = 8                                   # F = 24
FEATURE_DIM = NUM_JOINTS * 3
BONE_PARENT = tuple(range(NUM_JOINTS - 1))       # simple kinematic chain 0-1-...-7
BONE_CHILD = tuple(range(1, NUM_JOINTS))
ANGLE_TRIPLES = tuple((i - 1, i, i + 1) for i in range(1, NUM_JOINTS - 1))
NUM_BONES = len(BONE_PARENT)
NUM_ANGLES = len(ANGLE_TRIPLES)

# linspace(0.5, 1.1, 7) as plain Python floats (baked into the kernel).
TARGET_BONE_LEN = tuple(0.5 + 0.6 * i / (NUM_BONES - 1) for i in range(NUM_BONES))
BONE_WEIGHT = 1.0
ANGLE_WEIGHT = 0.5
COS_MIN = -0.9      # joint angle must stay inside acos([-0.9, 0.9])
COS_MAX = 0.9
EPS = 1e-8

# The kernel below exploits the chain structure (bone b = joint b -> b+1, angle
# at joint i reuses bones i-1 and i) and the symmetric cosine bounds.
assert BONE_PARENT == tuple(range(NUM_JOINTS - 1))
assert BONE_CHILD == tuple(range(1, NUM_JOINTS))
assert ANGLE_TRIPLES == tuple((i - 1, i, i + 1) for i in range(1, NUM_JOINTS - 1))
assert COS_MIN == -COS_MAX


# ----------------------------------------------------------------------------
# Pallas kernel: one block of frames -> one [8,128] partial-sum tile.
#   x_ref   : [24, R, 128]  (row = joint*3 + coord; frame = global_row*128 + lane)
#   out_ref : [1, 8, 128]   (per-block partial sums, summed in JAX afterwards)
# ----------------------------------------------------------------------------
def _joint_constraint_kernel(x_ref, out_ref, *, block_rows, chunk_rows, n_valid,
                             bone_coeff, angle_coeff):
    num_chunks = block_rows // chunk_rows
    # first frame handled by this grid block
    block_frame0 = pl.program_id(0) * (block_rows * 128)

    # Hoisted mask helper: frame offset of each (row, lane) position within a
    # chunk.  Per chunk the mask costs one add + one compare + one select.
    rowlane = (lax.broadcasted_iota(jnp.int32, (chunk_rows, 128), 0) * 128
               + lax.broadcasted_iota(jnp.int32, (chunk_rows, 128), 1))

    def chunk_body(ci, acc):
        row0 = pl.multiple_of(ci * chunk_rows, chunk_rows)

        def coord(r):                                    # -> [chunk_rows, 128] f32
            return x_ref[r, pl.ds(row0, chunk_rows), :].astype(jnp.float32)

        bone_pf = None        # per-frame bone-length penalty
        ang_pf = None         # per-frame joint-angle penalty
        prev_d = None
        prev_inv = None
        prev_joint = [coord(k) for k in range(3)]        # joint 0
        for b in range(NUM_BONES):
            child = [coord(3 * BONE_CHILD[b] + k) for k in range(3)]
            d = [child[k] - prev_joint[k] for k in range(3)]
            sq = d[0] * d[0] + d[1] * d[1] + d[2] * d[2] + EPS
            inv = lax.rsqrt(sq)                          # EUP
            ln = sq * inv                                # == sqrt(||d||^2 + eps)
            err = ln - TARGET_BONE_LEN[b]
            term = err * err
            bone_pf = term if bone_pf is None else bone_pf + term
            if b > 0:
                # angle at joint b: v1 = -d[b-1], v2 = d[b]; the |cos| hinge
                # (valid because COS_MIN == -COS_MAX) drops the sign flip.
                dot = prev_d[0] * d[0] + prev_d[1] * d[1] + prev_d[2] * d[2]
                cos_mag = jnp.abs(dot) * prev_inv * inv
                hinge = jnp.maximum(cos_mag - COS_MAX, 0.0)
                ang_pf = hinge if ang_pf is None else ang_pf + hinge
            prev_joint, prev_d, prev_inv = child, d, inv

        total = bone_coeff * bone_pf + angle_coeff * ang_pf
        # Mask frames that are either %128 padding or ragged-last-block garbage.
        frame = (block_frame0 + row0 * 128) + rowlane
        total = jnp.where(frame < n_valid, total, 0.0)
        return acc + total

    acc = lax.fori_loop(0, num_chunks, chunk_body,
                        jnp.zeros((chunk_rows, 128), jnp.float32))

    # Fold chunk rows down to the (8, 128) output tile and store (unmasked,
    # lane-dense vst); the final scalar reduction happens in JAX.
    folded = acc[0:8, :]
    for k in range(1, chunk_rows // 8):
        folded = folded + acc[k * 8:(k + 1) * 8, :]
    out_ref[0] = folded


# ----------------------------------------------------------------------------
# Wrapper: one relayout pass in XLA, everything else in the kernel.
# ----------------------------------------------------------------------------
@jax.jit
def joint_constraint_loss(predictions: jax.Array) -> jax.Array:
    B, S, F = predictions.shape
    assert F == FEATURE_DIM, "feature_dim must be num_joints * 3"
    n = B * S

    x2 = predictions.reshape(n, F)

    # Frames are addressed as (row, lane) = (frame // 128, frame % 128), so the
    # frame count is rounded up to a multiple of 128.  This pad is a real copy
    # only when B*S % 128 != 0 (or for tiny inputs); padded frames are masked
    # inside the kernel.
    n128 = 128 * ((n + 127) // 128)
    if n128 != n:
        x2 = jnp.pad(x2, ((0, n128 - n), (0, 0)))
    rows_total = n128 // 128

    # Single relayout pass (one XLA transpose; the reshape is free).  The input
    # dtype is preserved (bf16 inputs move at half traffic and are upcast
    # per-chunk in the kernel).
    xt = jnp.transpose(x2).reshape(F, rows_total, 128)

    # Rows (of 128 frames) per grid block: big blocks amortize the ~0.35 us
    # per-step overhead; cap at 256 rows = 32K frames = 3 MiB f32 per buffer so
    # double-buffered inputs fit v5e's default scoped VMEM with room to spare.
    R = min(256, 8 * ((rows_total + 7) // 8))
    # v7x megacore: keep >= 2 grid steps whenever there is enough data to split.
    if rows_total > 16 and (rows_total + R - 1) // R < 2:
        R = 8 * (((rows_total + 1) // 2 + 7) // 8)
    grid = (rows_total + R - 1) // R
    chunk_rows = 16 if R % 16 == 0 else 8

    kernel = functools.partial(
        _joint_constraint_kernel,
        block_rows=R,
        chunk_rows=chunk_rows,
        n_valid=n,
        bone_coeff=float(BONE_WEIGHT) / float(n * NUM_BONES),
        angle_coeff=float(ANGLE_WEIGHT) / float(n * NUM_ANGLES),
    )

    partials = pl.pallas_call(
        kernel,
        out_shape=jax.ShapeDtypeStruct((grid, 8, 128), jnp.float32),
        grid_spec=pltpu.PrefetchScalarGridSpec(
            num_scalar_prefetch=0,
            grid=(grid,),
            in_specs=[pl.BlockSpec((F, R, 128), lambda g: (0, g, 0))],
            out_specs=pl.BlockSpec((1, 8, 128), lambda g: (g, 0, 0)),
        ),
        compiler_params=pltpu.CompilerParams(
            dimension_semantics=("parallel",),     # per-block partials -> megacore OK
            vmem_limit_bytes=32 * 1024 * 1024,
        ),
    )(xt)

    return jnp.sum(partials)


# ----------------------------------------------------------------------------
# Pure-JAX reference (same math) for a sanity check.
# ----------------------------------------------------------------------------
def _reference(predictions):
    B, S, F = predictions.shape
    poses = predictions.reshape(B, S, NUM_JOINTS, 3).astype(jnp.float32)
    tgt = jnp.asarray(TARGET_BONE_LEN, jnp.float32)
    parent = poses[:, :, jnp.asarray(BONE_PARENT), :]
    child = poses[:, :, jnp.asarray(BONE_CHILD), :]
    lens = jnp.sqrt(jnp.sum((child - parent) ** 2, -1) + EPS)
    bone_loss = jnp.mean((lens - tgt[None, None, :]) ** 2)
    a = poses[:, :, jnp.asarray([t[0] for t in ANGLE_TRIPLES]), :]
    b = poses[:, :, jnp.asarray([t[1] for t in ANGLE_TRIPLES]), :]
    c = poses[:, :, jnp.asarray([t[2] for t in ANGLE_TRIPLES]), :]
    v1, v2 = a - b, c - b
    cos = jnp.sum(v1 * v2, -1) / (
        jnp.sqrt(jnp.sum(v1 * v1, -1) + EPS) * jnp.sqrt(jnp.sum(v2 * v2, -1) + EPS))
    ang_loss = jnp.mean(jnp.maximum(cos - COS_MAX, 0.0) + jnp.maximum(COS_MIN - cos, 0.0))
    return BONE_WEIGHT * bone_loss + ANGLE_WEIGHT * ang_loss


if __name__ == "__main__":
    key = jax.random.PRNGKey(0)

    # Small shape consistent with the module: [batch, seq_len, feature_dim].
    B, S = 2, 8
    predictions = jax.random.normal(key, (B, S, FEATURE_DIM), dtype=jnp.float32)
    loss = joint_constraint_loss(predictions)
    jax.block_until_ready(loss)
    ref = _reference(predictions)
    assert jnp.allclose(loss, ref, rtol=1e-4, atol=1e-5), (loss, ref)

    # Second shape exercising the multi-block / ragged-tail / chunk-loop path.
    key2 = jax.random.PRNGKey(0)
    predictions2 = jax.random.normal(key2, (8, 700, FEATURE_DIM), dtype=jnp.float32)
    loss2 = joint_constraint_loss(predictions2)
    jax.block_until_ready(loss2)
    ref2 = _reference(predictions2)
    assert jnp.allclose(loss2, ref2, rtol=1e-4, atol=1e-5), (loss2, ref2)

    print("KERNEL_OK")
</pallas_src>

<mosaic_0001>
module attributes {stable_mosaic.version = 11 : i64} {
  func.func @_joint_constraint_kernel(%arg0: i32, %arg1: memref<24x8x128xf32, #tpu.memory_space<vmem>>, %arg2: memref<1x8x128xf32, #tpu.memory_space<vmem>>) attributes {dimension_semantics = [#tpu.dimension_semantics<parallel>], iteration_bounds = array<i64: 1>, scalar_prefetch = 0 : i64, scratch_operands = 0 : i64, tpu.core_type = #tpu.core_type<tc>, window_params = [{transform_indices = @transform_0, window_bounds = array<i64: 24, 8, 128>}, {transform_indices = @transform_1, window_bounds = array<i64: 1, 8, 128>}]} {
    %c1024_i32 = arith.constant 1024 : i32
    %0 = arith.muli %arg0, %c1024_i32 : i32
    %1 = tpu.iota {dimensions = array<i32: 0>} : vector<8x128xi32>
    %c128_i32 = arith.constant 128 : i32
    %2 = vector.broadcast %c128_i32 : i32 to vector<8x128xi32>
    %3 = arith.muli %1, %2 : vector<8x128xi32>
    %4 = tpu.iota {dimensions = array<i32: 1>} : vector<8x128xi32>
    %5 = arith.addi %3, %4 : vector<8x128xi32>
    %cst = arith.constant 0.000000e+00 : f32
    %6 = vector.broadcast %cst : f32 to vector<8x128xf32>
    %c0_i32 = arith.constant 0 : i32
    %c8_i32 = arith.constant 8 : i32
    %7 = arith.muli %c0_i32, %c8_i32 : i32
    %8 = tpu.assume_multiple %7, 8 : i32
    %c0 = arith.constant 0 : index
    %9 = arith.index_cast %8 : i32 to index
    %c0_0 = arith.constant 0 : index
    %10 = vector.load %arg1[%c0, %9, %c0_0] : memref<24x8x128xf32, #tpu.memory_space<vmem>>, vector<1x8x128xf32>
    %11 = vector.shape_cast %10 : vector<1x8x128xf32> to vector<8x128xf32>
    %c1 = arith.constant 1 : index
    %12 = arith.index_cast %8 : i32 to index
    %c0_1 = arith.constant 0 : index
    %13 = vector.load %arg1[%c1, %12, %c0_1] : memref<24x8x128xf32, #tpu.memory_space<vmem>>, vector<1x8x128xf32>
    %14 = vector.shape_cast %13 : vector<1x8x128xf32> to vector<8x128xf32>
    %c2 = arith.constant 2 : index
    %15 = arith.index_cast %8 : i32 to index
    %c0_2 = arith.constant 0 : index
    %16 = vector.load %arg1[%c2, %15, %c0_2] : memref<24x8x128xf32, #tpu.memory_space<vmem>>, vector<1x8x128xf32>
    %17 = vector.shape_cast %16 : vector<1x8x128xf32> to vector<8x128xf32>
    %c3 = arith.constant 3 : index
    %18 = arith.index_cast %8 : i32 to index
    %c0_3 = arith.constant 0 : index
    %19 = vector.load %arg1[%c3, %18, %c0_3] : memref<24x8x128xf32, #tpu.memory_space<vmem>>, vector<1x8x128xf32>
    %20 = vector.shape_cast %19 : vector<1x8x128xf32> to vector<8x128xf32>
    %c4 = arith.constant 4 : index
    %21 = arith.index_cast %8 : i32 to index
    %c0_4 = arith.constant 0 : index
    %22 = vector.load %arg1[%c4, %21, %c0_4] : memref<24x8x128xf32, #tpu.memory_space<vmem>>, vector<1x8x128xf32>
    %23 = vector.shape_cast %22 : vector<1x8x128xf32> to vector<8x128xf32>
    %c5 = arith.constant 5 : index
    %24 = arith.index_cast %8 : i32 to index
    %c0_5 = arith.constant 0 : index
    %25 = vector.load %arg1[%c5, %24, %c0_5] : memref<24x8x128xf32, #tpu.memory_space<vmem>>, vector<1x8x128xf32>
    %26 = vector.shape_cast %25 : vector<1x8x128xf32> to vector<8x128xf32>
    %27 = arith.subf %20, %11 : vector<8x128xf32>
    %28 = arith.subf %23, %14 : vector<8x128xf32>
    %29 = arith.subf %26, %17 : vector<8x128xf32>
    %30 = arith.mulf %27, %27 : vector<8x128xf32>
    %31 = arith.mulf %28, %28 : vector<8x128xf32>
    %32 = arith.addf %30, %31 : vector<8x128xf32>
    %33 = arith.mulf %29, %29 : vector<8x128xf32>
    %34 = arith.addf %32, %33 : vector<8x128xf32>
    %cst_6 = arith.constant 9.99999993E-9 : f32
    %35 = vector.broadcast %cst_6 : f32 to vector<8x128xf32>
    %36 = arith.addf %34, %35 : vector<8x128xf32>
    %37 = math.rsqrt %36 : vector<8x128xf32>
    %38 = arith.mulf %36, %37 : vector<8x128xf32>
    %cst_7 = arith.constant 5.000000e-01 : f32
    %39 = vector.broadcast %cst_7 : f32 to vector<8x128xf32>
    %40 = arith.subf %38, %39 : vector<8x128xf32>
    %41 = arith.mulf %40, %40 : vector<8x128xf32>
    %c6 = arith.constant 6 : index
    %42 = arith.index_cast %8 : i32 to index
    %c0_8 = arith.constant 0 : index
    %43 = vector.load %arg1[%c6, %42, %c0_8] : memref<24x8x128xf32, #tpu.memory_space<vmem>>, vector<1x8x128xf32>
    %44 = vector.shape_cast %43 : vector<1x8x128xf32> to vector<8x128xf32>
    %c7 = arith.constant 7 : index
    %45 = arith.index_cast %8 : i32 to index
    %c0_9 = arith.constant 0 : index
    %46 = vector.load %arg1[%c7, %45, %c0_9] : memref<24x8x128xf32, #tpu.memory_space<vmem>>, vector<1x8x128xf32>
    %47 = vector.shape_cast %46 : vector<1x8x128xf32> to vector<8x128xf32>
    %c8 = arith.constant 8 : index
    %48 = arith.index_cast %8 : i32 to index
    %c0_10 = arith.constant 0 : index
    %49 = vector.load %arg1[%c8, %48, %c0_10] : memref<24x8x128xf32, #tpu.memory_space<vmem>>, vector<1x8x128xf32>
    %50 = vector.shape_cast %49 : vector<1x8x128xf32> to vector<8x128xf32>
    %51 = arith.subf %44, %20 : vector<8x128xf32>
    %52 = arith.subf %47, %23 : vector<8x128xf32>
    %53 = arith.subf %50, %26 : vector<8x128xf32>
    %54 = arith.mulf %51, %51 : vector<8x128xf32>
    %55 = arith.mulf %52, %52 : vector<8x128xf32>
    %56 = arith.addf %54, %55 : vector<8x128xf32>
    %57 = arith.mulf %53, %53 : vector<8x128xf32>
    %58 = arith.addf %56, %57 : vector<8x128xf32>
    %cst_11 = arith.constant 9.99999993E-9 : f32
    %59 = vector.broadcast %cst_11 : f32 to vector<8x128xf32>
    %60 = arith.addf %58, %59 : vector<8x128xf32>
    %61 = math.rsqrt %60 : vector<8x128xf32>
    %62 = arith.mulf %60, %61 : vector<8x128xf32>
    %cst_12 = arith.constant 6.000000e-01 : f32
    %63 = vector.broadcast %cst_12 : f32 to vector<8x128xf32>
    %64 = arith.subf %62, %63 : vector<8x128xf32>
    %65 = arith.mulf %64, %64 : vector<8x128xf32>
    %66 = arith.addf %41, %65 : vector<8x128xf32>
    %67 = arith.mulf %27, %51 : vector<8x128xf32>
    %68 = arith.mulf %28, %52 : vector<8x128xf32>
    %69 = arith.addf %67, %68 : vector<8x128xf32>
    %70 = arith.mulf %29, %53 : vector<8x128xf32>
    %71 = arith.addf %69, %70 : vector<8x128xf32>
    %72 = math.absf %71 : vector<8x128xf32>
    %73 = arith.mulf %72, %37 : vector<8x128xf32>
    %74 = arith.mulf %73, %61 : vector<8x128xf32>
    %cst_13 = arith.constant 0.899999976 : f32
    %75 = vector.broadcast %cst_13 : f32 to vector<8x128xf32>
    %76 = arith.subf %74, %75 : vector<8x128xf32>
    %cst_14 = arith.constant 0.000000e+00 : f32
    %77 = vector.broadcast %cst_14 : f32 to vector<8x128xf32>
    %78 = arith.maximumf %76, %77 : vector<8x128xf32>
    %c9 = arith.constant 9 : index
    %79 = arith.index_cast %8 : i32 to index
    %c0_15 = arith.constant 0 : index
    %80 = vector.load %arg1[%c9, %79, %c0_15] : memref<24x8x128xf32, #tpu.memory_space<vmem>>, vector<1x8x128xf32>
    %81 = vector.shape_cast %80 : vector<1x8x128xf32> to vector<8x128xf32>
    %c10 = arith.constant 10 : index
    %82 = arith.index_cast %8 : i32 to index
    %c0_16 = arith.constant 0 : index
    %83 = vector.load %arg1[%c10, %82, %c0_16] : memref<24x8x128xf32, #tpu.memory_space<vmem>>, vector<1x8x128xf32>
    %84 = vector.shape_cast %83 : vector<1x8x128xf32> to vector<8x128xf32>
    %c11 = arith.constant 11 : index
    %85 = arith.index_cast %8 : i32 to index
    %c0_17 = arith.constant 0 : index
    %86 = vector.load %arg1[%c11, %85, %c0_17] : memref<24x8x128xf32, #tpu.memory_space<vmem>>, vector<1x8x128xf32>
    %87 = vector.shape_cast %86 : vector<1x8x128xf32> to vector<8x128xf32>
    %88 = arith.subf %81, %44 : vector<8x128xf32>
    %89 = arith.subf %84, %47 : vector<8x128xf32>
    %90 = arith.subf %87, %50 : vector<8x128xf32>
    %91 = arith.mulf %88, %88 : vector<8x128xf32>
    %92 = arith.mulf %89, %89 : vector<8x128xf32>
    %93 = arith.addf %91, %92 : vector<8x128xf32>
    %94 = arith.mulf %90, %90 : vector<8x128xf32>
    %95 = arith.addf %93, %94 : vector<8x128xf32>
    %cst_18 = arith.constant 9.99999993E-9 : f32
    %96 = vector.broadcast %cst_18 : f32 to vector<8x128xf32>
    %97 = arith.addf %95, %96 : vector<8x128xf32>
    %98 = math.rsqrt %97 : vector<8x128xf32>
    %99 = arith.mulf %97, %98 : vector<8x128xf32>
    %cst_19 = arith.constant 0.699999988 : f32
    %100 = vector.broadcast %cst_19 : f32 to vector<8x128xf32>
    %101 = arith.subf %99, %100 : vector<8x128xf32>
    %102 = arith.mulf %101, %101 : vector<8x128xf32>
    %103 = arith.addf %66, %102 : vector<8x128xf32>
    %104 = arith.mulf %51, %88 : vector<8x128xf32>
    %105 = arith.mulf %52, %89 : vector<8x128xf32>
    %106 = arith.addf %104, %105 : vector<8x128xf32>
    %107 = arith.mulf %53, %90 : vector<8x128xf32>
    %108 = arith.addf %106, %107 : vector<8x128xf32>
    %109 = math.absf %108 : vector<8x128xf32>
    %110 = arith.mulf %109, %61 : vector<8x128xf32>
    %111 = arith.mulf %110, %98 : vector<8x128xf32>
    %cst_20 = arith.constant 0.899999976 : f32
    %112 = vector.broadcast %cst_20 : f32 to vector<8x128xf32>
    %113 = arith.subf %111, %112 : vector<8x128xf32>
    %cst_21 = arith.constant 0.000000e+00 : f32
    %114 = vector.broadcast %cst_21 : f32 to vector<8x128xf32>
    %115 = arith.maximumf %113, %114 : vector<8x128xf32>
    %116 = arith.addf %78, %115 : vector<8x128xf32>
    %c12 = arith.constant 12 : index
    %117 = arith.index_cast %8 : i32 to index
    %c0_22 = arith.constant 0 : index
    %118 = vector.load %arg1[%c12, %117, %c0_22] : memref<24x8x128xf32, #tpu.memory_space<vmem>>, vector<1x8x128xf32>
    %119 = vector.shape_cast %118 : vector<1x8x128xf32> to vector<8x128xf32>
    %c13 = arith.constant 13 : index
    %120 = arith.index_cast %8 : i32 to index
    %c0_23 = arith.constant 0 : index
    %121 = vector.load %arg1[%c13, %120, %c0_23] : memref<24x8x128xf32, #tpu.memory_space<vmem>>, vector<1x8x128xf32>
    %122 = vector.shape_cast %121 : vector<1x8x128xf32> to vector<8x128xf32>
    %c14 = arith.constant 14 : index
    %123 = arith.index_cast %8 : i32 to index
    %c0_24 = arith.constant 0 : index
    %124 = vector.load %arg1[%c14, %123, %c0_24] : memref<24x8x128xf32, #tpu.memory_space<vmem>>, vector<1x8x128xf32>
    %125 = vector.shape_cast %124 : vector<1x8x128xf32> to vector<8x128xf32>
    %126 = arith.subf %119, %81 : vector<8x128xf32>
    %127 = arith.subf %122, %84 : vector<8x128xf32>
    %128 = arith.subf %125, %87 : vector<8x128xf32>
    %129 = arith.mulf %126, %126 : vector<8x128xf32>
    %130 = arith.mulf %127, %127 : vector<8x128xf32>
    %131 = arith.addf %129, %130 : vector<8x128xf32>
    %132 = arith.mulf %128, %128 : vector<8x128xf32>
    %133 = arith.addf %131, %132 : vector<8x128xf32>
    %cst_25 = arith.constant 9.99999993E-9 : f32
    %134 = vector.broadcast %cst_25 : f32 to vector<8x128xf32>
    %135 = arith.addf %133, %134 : vector<8x128xf32>
    %136 = math.rsqrt %135 : vector<8x128xf32>
    %137 = arith.mulf %135, %136 : vector<8x128xf32>
    %cst_26 = arith.constant 8.000000e-01 : f32
    %138 = vector.broadcast %cst_26 : f32 to vector<8x128xf32>
    %139 = arith.subf %137, %138 : vector<8x128xf32>
    %140 = arith.mulf %139, %139 : vector<8x128xf32>
    %141 = arith.addf %103, %140 : vector<8x128xf32>
    %142 = arith.mulf %88, %126 : vector<8x128xf32>
    %143 = arith.mulf %89, %127 : vector<8x128xf32>
    %144 = arith.addf %142, %143 : vector<8x128xf32>
    %145 = arith.mulf %90, %128 : vector<8x128xf32>
    %146 = arith.addf %144, %145 : vector<8x128xf32>
    %147 = math.absf %146 : vector<8x128xf32>
    %148 = arith.mulf %147, %98 : vector<8x128xf32>
    %149 = arith.mulf %148, %136 : vector<8x128xf32>
    %cst_27 = arith.constant 0.899999976 : f32
    %150 = vector.broadcast %cst_27 : f32 to vector<8x128xf32>
    %151 = arith.subf %149, %150 : vector<8x128xf32>
    %cst_28 = arith.constant 0.000000e+00 : f32
    %152 = vector.broadcast %cst_28 : f32 to vector<8x128xf32>
    %153 = arith.maximumf %151, %152 : vector<8x128xf32>
    %154 = arith.addf %116, %153 : vector<8x128xf32>
    %c15 = arith.constant 15 : index
    %155 = arith.index_cast %8 : i32 to index
    %c0_29 = arith.constant 0 : index
    %156 = vector.load %arg1[%c15, %155, %c0_29] : memref<24x8x128xf32, #tpu.memory_space<vmem>>, vector<1x8x128xf32>
    %157 = vector.shape_cast %156 : vector<1x8x128xf32> to vector<8x128xf32>
    %c16 = arith.constant 16 : index
    %158 = arith.index_cast %8 : i32 to index
    %c0_30 = arith.constant 0 : index
    %159 = vector.load %arg1[%c16, %158, %c0_30] : memref<24x8x128xf32, #tpu.memory_space<vmem>>, vector<1x8x128xf32>
    %160 = vector.shape_cast %159 : vector<1x8x128xf32> to vector<8x128xf32>
    %c17 = arith.constant 17 : index
    %161 = arith.index_cast %8 : i32 to index
    %c0_31 = arith.constant 0 : index
    %162 = vector.load %arg1[%c17, %161, %c0_31] : memref<24x8x128xf32, #tpu.memory_space<vmem>>, vector<1x8x128xf32>
    %163 = vector.shape_cast %162 : vector<1x8x128xf32> to vector<8x128xf32>
    %164 = arith.subf %157, %119 : vector<8x128xf32>
    %165 = arith.subf %160, %122 : vector<8x128xf32>
    %166 = arith.subf %163, %125 : vector<8x128xf32>
    %167 = arith.mulf %164, %164 : vector<8x128xf32>
    %168 = arith.mulf %165, %165 : vector<8x128xf32>
    %169 = arith.addf %167, %168 : vector<8x128xf32>
    %170 = arith.mulf %166, %166 : vector<8x128xf32>
    %171 = arith.addf %169, %170 : vector<8x128xf32>
    %cst_32 = arith.constant 9.99999993E-9 : f32
    %172 = vector.broadcast %cst_32 : f32 to vector<8x128xf32>
    %173 = arith.addf %171, %172 : vector<8x128xf32>
    %174 = math.rsqrt %173 : vector<8x128xf32>
    %175 = arith.mulf %173, %174 : vector<8x128xf32>
    %cst_33 = arith.constant 0.899999976 : f32
    %176 = vector.broadcast %cst_33 : f32 to vector<8x128xf32>
    %177 = arith.subf %175, %176 : vector<8x128xf32>
    %178 = arith.mulf %177, %177 : vector<8x128xf32>
    %179 = arith.addf %141, %178 : vector<8x128xf32>
    %180 = arith.mulf %126, %164 : vector<8x128xf32>
    %181 = arith.mulf %127, %165 : vector<8x128xf32>
    %182 = arith.addf %180, %181 : vector<8x128xf32>
    %183 = arith.mulf %128, %166 : vector<8x128xf32>
    %184 = arith.addf %182, %183 : vector<8x128xf32>
    %185 = math.absf %184 : vector<8x128xf32>
    %186 = arith.mulf %185, %136 : vector<8x128xf32>
    %187 = arith.mulf %186, %174 : vector<8x128xf32>
    %cst_34 = arith.constant 0.899999976 : f32
    %188 = vector.broadcast %cst_34 : f32 to vector<8x128xf32>
    %189 = arith.subf %187, %188 : vector<8x128xf32>
    %cst_35 = arith.constant 0.000000e+00 : f32
    %190 = vector.broadcast %cst_35 : f32 to vector<8x128xf32>
    %191 = arith.maximumf %189, %190 : vector<8x128xf32>
    %192 = arith.addf %154, %191 : vector<8x128xf32>
    %c18 = arith.constant 18 : index
    %193 = arith.index_cast %8 : i32 to index
    %c0_36 = arith.constant 0 : index
    %194 = vector.load %arg1[%c18, %193, %c0_36] : memref<24x8x128xf32, #tpu.memory_space<vmem>>, vector<1x8x128xf32>
    %195 = vector.shape_cast %194 : vector<1x8x128xf32> to vector<8x128xf32>
    %c19 = arith.constant 19 : index
    %196 = arith.index_cast %8 : i32 to index
    %c0_37 = arith.constant 0 : index
    %197 = vector.load %arg1[%c19, %196, %c0_37] : memref<24x8x128xf32, #tpu.memory_space<vmem>>, vector<1x8x128xf32>
    %198 = vector.shape_cast %197 : vector<1x8x128xf32> to vector<8x128xf32>
    %c20 = arith.constant 20 : index
    %199 = arith.index_cast %8 : i32 to index
    %c0_38 = arith.constant 0 : index
    %200 = vector.load %arg1[%c20, %199, %c0_38] : memref<24x8x128xf32, #tpu.memory_space<vmem>>, vector<1x8x128xf32>
    %201 = vector.shape_cast %200 : vector<1x8x128xf32> to vector<8x128xf32>
    %202 = arith.subf %195, %157 : vector<8x128xf32>
    %203 = arith.subf %198, %160 : vector<8x128xf32>
    %204 = arith.subf %201, %163 : vector<8x128xf32>
    %205 = arith.mulf %202, %202 : vector<8x128xf32>
    %206 = arith.mulf %203, %203 : vector<8x128xf32>
    %207 = arith.addf %205, %206 : vector<8x128xf32>
    %208 = arith.mulf %204, %204 : vector<8x128xf32>
    %209 = arith.addf %207, %208 : vector<8x128xf32>
    %cst_39 = arith.constant 9.99999993E-9 : f32
    %210 = vector.broadcast %cst_39 : f32 to vector<8x128xf32>
    %211 = arith.addf %209, %210 : vector<8x128xf32>
    %212 = math.rsqrt %211 : vector<8x128xf32>
    %213 = arith.mulf %211, %212 : vector<8x128xf32>
    %cst_40 = arith.constant 1.000000e+00 : f32
    %214 = vector.broadcast %cst_40 : f32 to vector<8x128xf32>
    %215 = arith.subf %213, %214 : vector<8x128xf32>
    %216 = arith.mulf %215, %215 : vector<8x128xf32>
    %217 = arith.addf %179, %216 : vector<8x128xf32>
    %218 = arith.mulf %164, %202 : vector<8x128xf32>
    %219 = arith.mulf %165, %203 : vector<8x128xf32>
    %220 = arith.addf %218, %219 : vector<8x128xf32>
    %221 = arith.mulf %166, %204 : vector<8x128xf32>
    %222 = arith.addf %220, %221 : vector<8x128xf32>
    %223 = math.absf %222 : vector<8x128xf32>
    %224 = arith.mulf %223, %174 : vector<8x128xf32>
    %225 = arith.mulf %224, %212 : vector<8x128xf32>
    %cst_41 = arith.constant 0.899999976 : f32
    %226 = vector.broadcast %cst_41 : f32 to vector<8x128xf32>
    %227 = arith.subf %225, %226 : vector<8x128xf32>
    %cst_42 = arith.constant 0.000000e+00 : f32
    %228 = vector.broadcast %cst_42 : f32 to vector<8x128xf32>
    %229 = arith.maximumf %227, %228 : vector<8x128xf32>
    %230 = arith.addf %192, %229 : vector<8x128xf32>
    %c21 = arith.constant 21 : index
    %231 = arith.index_cast %8 : i32 to index
    %c0_43 = arith.constant 0 : index
    %232 = vector.load %arg1[%c21, %231, %c0_43] : memref<24x8x128xf32, #tpu.memory_space<vmem>>, vector<1x8x128xf32>
    %233 = vector.shape_cast %232 : vector<1x8x128xf32> to vector<8x128xf32>
    %c22 = arith.constant 22 : index
    %234 = arith.index_cast %8 : i32 to index
    %c0_44 = arith.constant 0 : index
    %235 = vector.load %arg1[%c22, %234, %c0_44] : memref<24x8x128xf32, #tpu.memory_space<vmem>>, vector<1x8x128xf32>
    %236 = vector.shape_cast %235 : vector<1x8x128xf32> to vector<8x128xf32>
    %c23 = arith.constant 23 : index
    %237 = arith.index_cast %8 : i32 to index
    %c0_45 = arith.constant 0 : index
    %238 = vector.load %arg1[%c23, %237, %c0_45] : memref<24x8x128xf32, #tpu.memory_space<vmem>>, vector<1x8x128xf32>
    %239 = vector.shape_cast %238 : vector<1x8x128xf32> to vector<8x128xf32>
    %240 = arith.subf %233, %195 : vector<8x128xf32>
    %241 = arith.subf %236, %198 : vector<8x128xf32>
    %242 = arith.subf %239, %201 : vector<8x128xf32>
    %243 = arith.mulf %240, %240 : vector<8x128xf32>
    %244 = arith.mulf %241, %241 : vector<8x128xf32>
    %245 = arith.addf %243, %244 : vector<8x128xf32>
    %246 = arith.mulf %242, %242 : vector<8x128xf32>
    %247 = arith.addf %245, %246 : vector<8x128xf32>
    %cst_46 = arith.constant 9.99999993E-9 : f32
    %248 = vector.broadcast %cst_46 : f32 to vector<8x128xf32>
    %249 = arith.addf %247, %248 : vector<8x128xf32>
    %250 = math.rsqrt %249 : vector<8x128xf32>
    %251 = arith.mulf %249, %250 : vector<8x128xf32>
    %cst_47 = arith.constant 1.100000e+00 : f32
    %252 = vector.broadcast %cst_47 : f32 to vector<8x128xf32>
    %253 = arith.subf %251, %252 : vector<8x128xf32>
    %254 = arith.mulf %253, %253 : vector<8x128xf32>
    %255 = arith.addf %217, %254 : vector<8x128xf32>
    %256 = arith.mulf %202, %240 : vector<8x128xf32>
    %257 = arith.mulf %203, %241 : vector<8x128xf32>
    %258 = arith.addf %256, %257 : vector<8x128xf32>
    %259 = arith.mulf %204, %242 : vector<8x128xf32>
    %260 = arith.addf %258, %259 : vector<8x128xf32>
    %261 = math.absf %260 : vector<8x128xf32>
    %262 = arith.mulf %261, %212 : vector<8x128xf32>
    %263 = arith.mulf %262, %250 : vector<8x128xf32>
    %cst_48 = arith.constant 0.899999976 : f32
    %264 = vector.broadcast %cst_48 : f32 to vector<8x128xf32>
    %265 = arith.subf %263, %264 : vector<8x128xf32>
    %cst_49 = arith.constant 0.000000e+00 : f32
    %266 = vector.broadcast %cst_49 : f32 to vector<8x128xf32>
    %267 = arith.maximumf %265, %266 : vector<8x128xf32>
    %268 = arith.addf %230, %267 : vector<8x128xf32>
    %cst_50 = arith.constant 0.00892857183 : f32
    %269 = vector.broadcast %cst_50 : f32 to vector<8x128xf32>
    %270 = arith.mulf %269, %255 : vector<8x128xf32>
    %cst_51 = arith.constant 0.00520833349 : f32
    %271 = vector.broadcast %cst_51 : f32 to vector<8x128xf32>
    %272 = arith.mulf %271, %268 : vector<8x128xf32>
    %273 = arith.addf %270, %272 : vector<8x128xf32>
    %c128_i32_52 = arith.constant 128 : i32
    %274 = arith.muli %8, %c128_i32_52 : i32
    %275 = arith.addi %0, %274 : i32
    %276 = vector.broadcast %275 : i32 to vector<8x128xi32>
    %277 = arith.addi %276, %5 : vector<8x128xi32>
    %c16_i32 = arith.constant 16 : i32
    %278 = vector.broadcast %c16_i32 : i32 to vector<8x128xi32>
    %279 = arith.cmpi slt, %277, %278 : vector<8x128xi32>
    %cst_53 = arith.constant 0.000000e+00 : f32
    %280 = vector.broadcast %cst_53 : f32 to vector<8x128xf32>
    %281 = arith.select %279, %273, %280 : vector<8x128xi1>, vector<8x128xf32>
    %282 = arith.addf %6, %281 : vector<8x128xf32>
    %c1_i32 = arith.constant 1 : i32
    %c0_54 = arith.constant 0 : index
    %c0_55 = arith.constant 0 : index
    %c0_56 = arith.constant 0 : index
    %283 = vector.load %arg2[%c0_54, %c0_55, %c0_56] : memref<1x8x128xf32, #tpu.memory_space<vmem>>, vector<1x8x128xf32>
    %284 = vector.shape_cast %283 : vector<1x8x128xf32> to vector<8x128xf32>
    %285 = vector.shape_cast %282 : vector<8x128xf32> to vector<1x8x128xf32>
    tpu.vector_store %arg2[%c0_54, %c0_55, %c0_56], %285 {strides = array<i32>} : memref<1x8x128xf32, #tpu.memory_space<vmem>>, vector<1x8x128xf32>,
    return
  }
  func.func @transform_0(%arg0: i32) -> (i32, i32, i32) {
    %c0_i32 = arith.constant 0 : i32
    %c0_i32_0 = arith.constant 0 : i32
    %c0_i32_1 = arith.constant 0 : i32
    return %c0_i32, %arg0, %c0_i32_0 : i32, i32, i32
  }
  func.func @transform_1(%arg0: i32) -> (i32, i32, i32) {
    %c0_i32 = arith.constant 0 : i32
    %c0_i32_0 = arith.constant 0 : i32
    %c0_i32_1 = arith.constant 0 : i32
    return %arg0, %c0_i32, %c0_i32_0 : i32, i32, i32
  }
}

</mosaic_0001>

<bundles_post_ra>
// kernel: joint_constraint_loss.1
= control target key start
LH: loop header
LB: loop body
LE: loop exit
PB: predicated region body
PF: predicated region fallthrough
CT: control target
= control target key end

     0   :  { %s552_s0 = inlined_call_operand.vmem [shape: f32[24,1,128], index: 0, kind: input, shape index: {}]   ;;  %s553_s1 = inlined_call_operand.vmem [shape: f32[1,8,128], index: 1, kind: output, shape index: {}]  }
   0x1   :  { %v24_v0 = vld [vmem:[%s552_s0] sm:$0x1]  ;;  %v26_v1 = vld [vmem:[%s552_s0 + $0x1] sm:$0x1]  ;;  %v30_v2 = vld [vmem:[%s552_s0 + $0x3] sm:$0x1] }
   0x2   :  { %25 = vst [vmem:[#allocation2 + $0xb0] sm:$0x1] %v24_v0  ;;  %27 = vst [vmem:[#allocation2] sm:$0x1] %v26_v1  ;;  %v32_v3 = vld [vmem:[%s552_s0 + $0x4] sm:$0x1] }
   0x3   :  { %31 = vst [vmem:[#allocation2 + $0x48] sm:$0x1] %v30_v2  ;;  %v36_v4 = vld [vmem:[%s552_s0 + $0x6] sm:$0x1]  ;;  %v38_v5 = vld [vmem:[%s552_s0 + $0x7] sm:$0x1] }
   0x4   :  { %33 = vst [vmem:[#allocation2 + $0x60] sm:$0x1] %v32_v3  ;;  %37 = vst [vmem:[#allocation2 + $0x40] sm:$0x1] %v36_v4  ;;  %v42_v6 = vld [vmem:[%s552_s0 + $0x9] sm:$0x1] }
   0x5   :  { %39 = vst [vmem:[#allocation2 + $0x78] sm:$0x1] %v38_v5  ;;  %v44_v7 = vld [vmem:[%s552_s0 + $0xa] sm:$0x1]  ;;  %v48_v8 = vld [vmem:[%s552_s0 + $0xc] sm:$0x1] }
   0x6   :  { %43 = vst [vmem:[#allocation2 + $0x90] sm:$0x1] %v42_v6  ;;  %45 = vst [vmem:[#allocation2 + $0x18] sm:$0x1] %v44_v7  ;;  %v50_v9 = vld [vmem:[%s552_s0 + $0xd] sm:$0x1] }
   0x7   :  { %49 = vst [vmem:[#allocation2 + $0x38] sm:$0x1] %v48_v8  ;;  %v54_v10 = vld [vmem:[%s552_s0 + $0xf] sm:$0x1]  ;;  %v56_v11 = vld [vmem:[%s552_s0 + $0x10] sm:$0x1] }
   0x8   :  { %51 = vst [vmem:[#allocation2 + $0x50] sm:$0x1] %v50_v9  ;;  %55 = vst [vmem:[#allocation2 + $0xa0] sm:$0x1] %v54_v10  ;;  %v60_v12 = vld [vmem:[%s552_s0 + $0x12] sm:$0x1] }
   0x9   :  { %57 = vst [vmem:[#allocation2 + $0xa8] sm:$0x1] %v56_v11  ;;  %v62_v13 = vld [vmem:[%s552_s0 + $0x13] sm:$0x1]  ;;  %v66_v14 = vld [vmem:[%s552_s0 + $0x15] sm:$0x1] }
   0xa   :  { %61 = vst [vmem:[#allocation2 + $0x30] sm:$0x1] %v60_v12  ;;  %63 = vst [vmem:[#allocation2 + $0x58] sm:$0x1] %v62_v13  ;;  %v68_v15 = vld [vmem:[%s552_s0 + $0x16] sm:$0x1] }
   0xb   :  { %67 = vst [vmem:[#allocation2 + $0xb8] sm:$0x1] %v66_v14  ;;  %v28_v16 = vld [vmem:[%s552_s0 + $0x2] sm:$0x1]  ;;  %v34_v17 = vld [vmem:[%s552_s0 + $0x5] sm:$0x1] }
   0xc   :  { %69 = vst [vmem:[#allocation2 + $0x20] sm:$0x1] %v68_v15  ;;  %29 = vst [vmem:[#allocation2 + $0x10] sm:$0x1] %v28_v16  ;;  %v40_v18 = vld [vmem:[%s552_s0 + $0x8] sm:$0x1] }
   0xd   :  { %35 = vst [vmem:[#allocation2 + $0x28] sm:$0x1] %v34_v17  ;;  %v46_v19 = vld [vmem:[%s552_s0 + $0xb] sm:$0x1]  ;;  %v52_v20 = vld [vmem:[%s552_s0 + $0xe] sm:$0x1] }
   0xe   :  { %41 = vst [vmem:[#allocation2 + $0x88] sm:$0x1] %v40_v18  ;;  %47 = vst [vmem:[#allocation2 + $0x98] sm:$0x1] %v46_v19  ;;  %v58_v21 = vld [vmem:[%s552_s0 + $0x11] sm:$0x1] }
   0xf   :  { %53 = vst [vmem:[#allocation2 + $0x70] sm:$0x1] %v52_v20  ;;  %v64_v22 = vld [vmem:[%s552_s0 + $0x14] sm:$0x1]  ;;  %v70_v23 = vld [vmem:[%s552_s0 + $0x17] sm:$0x1] }
  0x10   :  { %59 = vst [vmem:[#allocation2 + $0x68] sm:$0x1] %v58_v21  ;;  %65 = vst [vmem:[#allocation2 + $0x80] sm:$0x1] %v64_v22  ;;  %v150_v24 = vld [vmem:[#allocation2 + $0xb0] sm:$0xff]  ;;  %v153_v25 = vld [vmem:[#allocation2] sm:$0xff] }
  0x11   :  { %71 = vst [vmem:[#allocation2 + $0x8] sm:$0x1] %v70_v23  ;;  %v159_v26 = vld [vmem:[#allocation2 + $0x48] sm:$0xff]  ;;  %v162_v27 = vld [vmem:[#allocation2 + $0x60] sm:$0xff]  ;;  %v184_v30 = vld [vmem:[#allocation2 + $0x78] sm:$0xff] }
  0x12   :  { %v166_v28 = vsub.f32 %v159_v26, %v150_v24  ;;  %v181_v29 = vld [vmem:[#allocation2 + $0x40] sm:$0xff]  ;;  %v167_v31 = vsub.f32 %v162_v27, %v153_v25  ;;  %v189_v33 = vsub.f32 %v184_v30, %v162_v27  ;;  %v214_v34 = vld [vmem:[#allocation2 + $0x90] sm:$0xff]  ;;  %v217_v35 = vld [vmem:[#allocation2 + $0x18] sm:$0xff] }
  0x13   :  { %v188_v32 = vsub.f32 %v181_v29, %v159_v26  ;;  %v248_v36 = vld [vmem:[#allocation2 + $0x38] sm:$0xff]  ;;  %v221_v38 = vsub.f32 %v214_v34, %v181_v29  ;;  %v222_v39 = vsub.f32 %v217_v35, %v184_v30  ;;  %v156_v43 = vld [vmem:[#allocation2 + $0x10] sm:$0xff]  ;;  %v282_v14 = vld [vmem:[#allocation2 + $0xa0] sm:$0xff] }
  0x14   :  { %v169_v37 = vmul.f32 %v166_v28, %v166_v28  ;;  %v170_v40 = vmul.f32 %v167_v31, %v167_v31  ;;  %v192_v42 = vmul.f32 %v189_v33, %v189_v33  ;;  %v165_v44 = vld [vmem:[#allocation2 + $0x28] sm:$0xff]  ;;  %v251_v47 = vld [vmem:[#allocation2 + $0x50] sm:$0xff]  ;;  %v255_v48 = vsub.f32 %v248_v36, %v214_v34  ;;  %v319_v30 = vld [vmem:[#allocation2 + $0x58] sm:$0xff] }
  0x15   :  { %v191_v41 = vmul.f32 %v188_v32, %v188_v32  ;;  %v224_v45 = vmul.f32 %v221_v38, %v221_v38  ;;  %v225_v46 = vmul.f32 %v222_v39, %v222_v39  ;;  %v168_v49 = vsub.f32 %v165_v44, %v156_v43  ;;  %v187_v51 = vld [vmem:[#allocation2 + $0x88] sm:$0xff]  ;;  %v220_v54 = vld [vmem:[#allocation2 + $0x98] sm:$0xff]  ;;  %v316_v21 = vld [vmem:[#allocation2 + $0x30] sm:$0xff] }
  0x16   :  { %v171_v50 = vadd.f32 %v170_v40, %v169_v37  ;;  %v202_v52 = vmul.f32 %v188_v32, %v166_v28  ;;  %v203_v53 = vmul.f32 %v189_v33, %v167_v31  ;;  %v254_v55 = vld [vmem:[#allocation2 + $0x70] sm:$0xff]  ;;  %v190_v56 = vsub.f32 %v187_v51, %v165_v44  ;;  %v285_v15 = vld [vmem:[#allocation2 + $0xa8] sm:$0xff]  ;;  %v353_v43 = vld [vmem:[#allocation2 + $0x20] sm:$0xff] }
  0x17   :  { %v193_v57 = vadd.f32 %v192_v42, %v191_v41  ;;  %v223_v58 = vsub.f32 %v220_v54, %v187_v51  ;;  %v226_v59 = vadd.f32 %v225_v46, %v224_v45  ;;  %v172_v60 = vmul.f32 %v168_v49, %v168_v49  ;;  %v288_v20 = vld [vmem:[#allocation2 + $0x68] sm:$0xff]  ;;  %v322_v31 = vld [vmem:[#allocation2 + $0x80] sm:$0xff] }
  0x18   :  { %v256_v61 = vsub.f32 %v251_v47, %v217_v35  ;;  %v257_v62 = vsub.f32 %v254_v55, %v220_v54  ;;  %v194_v63 = vmul.f32 %v190_v56, %v190_v56  ;;  %v235_v1 = vmul.f32 %v221_v38, %v188_v32  ;;  %v350_v35 = vld [vmem:[#allocation2 + $0xb8] sm:$0xff]  ;;  %v356_v44 = vld [vmem:[#allocation2 + $0x8] sm:$0xff] }
  0x19   :  { %v227_v0 = vmul.f32 %v223_v58, %v223_v58  ;;  %v173_v2 = vadd.f32 %v172_v60, %v171_v50  ;;  %v236_v3 = vmul.f32 %v222_v39, %v189_v33  ;;  %v258_v4 = vmul.f32 %v255_v48, %v255_v48 }
  0x1a   :  { %v259_v5 = vmul.f32 %v256_v61, %v256_v61  ;;  %v195_v6 = vadd.f32 %v194_v63, %v193_v57  ;;  %v204_v7 = vadd.f32 %v203_v53, %v202_v52  ;;  %v261_v9 = vmul.f32 %v257_v62, %v257_v62 }
  0x1b   :  { %v228_v8 = vadd.f32 %v227_v0, %v226_v59  ;;  %v533_v10 = vadd.f32 1e-08, %v173_v2  ;;  %v205_v11 = vmul.f32 %v190_v56, %v168_v49  ;;  %v269_v13 = vmul.f32 %v255_v48, %v221_v38 }
  0x1c   :  { %v260_v12 = vadd.f32 %v259_v5, %v258_v4  ;;  %v535_v16 = vadd.f32 1e-08, %v195_v6  ;;  %v238_v18 = vmul.f32 %v223_v58, %v190_v56  ;;  %v270_v19 = vmul.f32 %v256_v61, %v222_v39 }
  0x1d   :  { %v537_v17 = vadd.f32 1e-08, %v228_v8  ;;  %437 = vrsqrt.f32 %v533_v10  ;;  %v237_v22 = vadd.f32 %v236_v3, %v235_v1  ;;  %v272_v24 = vmul.f32 %v257_v62, %v223_v58 }
  0x1e   :  { %v262_v23 = vadd.f32 %v261_v9, %v260_v12  ;;  %439 = vrsqrt.f32 %v535_v16  ;;  %v271_v25 = vadd.f32 %v270_v19, %v269_v13  ;;  %v289_v26 = vsub.f32 %v282_v14, %v248_v36 }
  0x1f   :  { %v290_v27 = vsub.f32 %v285_v15, %v251_v47  ;;  %441 = vrsqrt.f32 %v537_v17  ;;  %v291_v29 = vsub.f32 %v288_v20, %v254_v55  ;;  %v323_v32 = vsub.f32 %v316_v21, %v282_v14 }
  0x20   :  { %v542_v28 = vadd.f32 1e-08, %v262_v23  ;;  %v292_v33 = vmul.f32 %v289_v26, %v289_v26  ;;  %v303_v38 = vmul.f32 %v289_v26, %v255_v48  ;;  %v206_v40 = vadd.f32 %v205_v11, %v204_v7 }
  0x21   :  { %v293_v34 = vmul.f32 %v290_v27, %v290_v27  ;;  %v295_v37 = vmul.f32 %v291_v29, %v291_v29  ;;  %v304_v39 = vmul.f32 %v290_v27, %v256_v61  ;;  %v324_v36 = vsub.f32 %v319_v30, %v285_v15 }
  0x22   :  { %443 = vrsqrt.f32 %v542_v28  ;;  %v325_v42 = vsub.f32 %v322_v31, %v288_v20  ;;  %v239_v45 = vadd.f32 %v238_v18, %v237_v22  ;;  %v273_v46 = vadd.f32 %v272_v24, %v271_v25 }
  0x23   :  { %v294_v41 = vadd.f32 %v293_v34, %v292_v33  ;;  %v326_v47 = vmul.f32 %v323_v32, %v323_v32  ;;  %v357_v49 = vsub.f32 %v350_v35, %v316_v21  ;;  %v306_v51 = vmul.f32 %v291_v29, %v257_v62 }
  0x24   :  { %v327_v52 = vmul.f32 %v324_v36, %v324_v36  ;;  %v329_v53 = vmul.f32 %v325_v42, %v325_v42  ;;  %v305_v54 = vadd.f32 %v304_v39, %v303_v38  ;;  %v337_v55 = vmul.f32 %v323_v32, %v289_v26 }
  0x25   :  { %v296_v50 = vadd.f32 %v295_v37, %v294_v41  ;;  %v358_v56 = vsub.f32 %v353_v43, %v319_v30  ;;  %v359_v57 = vsub.f32 %v356_v44, %v322_v31  ;;  %v338_v59 = vmul.f32 %v324_v36, %v290_v27 }
  0x26   :  { %v328_v58 = vadd.f32 %v327_v52, %v326_v47  ;;  %v360_v60 = vmul.f32 %v357_v49, %v357_v49  ;;  %v207_v1 = vand.u32 2147483647, %v206_v40  ;;  %v240_v2 = vand.u32 2147483647, %v239_v45 }
  0x27   :  { %v297_v48 = vadd.f32 1e-08, %v296_v50  ;;  %v361_v61 = vmul.f32 %v358_v56, %v358_v56  ;;  %v363_v63 = vmul.f32 %v359_v57, %v359_v57  ;;  %v274_v3 = vand.u32 2147483647, %v273_v46 }
  0x28   :  { %v330_v0 = vadd.f32 %v329_v53, %v328_v58  ;;  %v307_v62 = vadd.f32 %v306_v51, %v305_v54  ;;  %v339_v7 = vadd.f32 %v338_v59, %v337_v55  ;;  %v340_v8 = vmul.f32 %v325_v42, %v291_v29 }
  0x29   :  { %445 = vrsqrt.f32 %v297_v48  ;;  %v362_v4 = vadd.f32 %v361_v61, %v360_v60  ;;  %v371_v14 = vmul.f32 %v357_v49, %v323_v32  ;;  %v372_v20 = vmul.f32 %v358_v56, %v324_v36 }
  0x2a   :  { %v438_v5 = vpop.eup %437  ;;  %v331_v6 = vadd.f32 1e-08, %v330_v0  ;;  %v308_v29 = vand.u32 2147483647, %v307_v62  ;;  %v341_v37 = vadd.f32 %v340_v8, %v339_v7  ;;  %v374_v40 = vmul.f32 %v359_v57, %v325_v42 }
  0x2b   :  { %v440_v9 = vpop.eup %439  ;;  %v176_v11 = vmul.f32 %v438_v5, %v533_v10  ;;  %v208_v12 = vmul.f32 %v438_v5, %v207_v1  ;;  %v364_v13 = vadd.f32 %v363_v63, %v362_v4  ;;  %v373_v39 = vadd.f32 %v372_v20, %v371_v14 }
  0x2c   :  { %v442_v15 = vpop.eup %441  ;;  %v198_v18 = vmul.f32 %v440_v9, %v535_v16  ;;  %v241_v19 = vmul.f32 %v440_v9, %v240_v2  ;;  %447 = vrsqrt.f32 %v331_v6  ;;  %v342_v50 = vand.u32 2147483647, %v341_v37 }
  0x2d   :  { %v424_v21 = vadd.f32 -0.5, %v176_v11  ;;  %v209_v22 = vmul.f32 %v440_v9, %v208_v12  ;;  %v231_v23 = vmul.f32 %v442_v15, %v537_v17  ;;  %v275_v24 = vmul.f32 %v442_v15, %v274_v3 }
  0x2e   :  { %v425_v26 = vadd.f32 -0.6, %v198_v18  ;;  %v242_v27 = vmul.f32 %v442_v15, %v241_v19  ;;  %v365_v30 = vadd.f32 1e-08, %v364_v13  ;;  %v375_v51 = vadd.f32 %v374_v40, %v373_v39 }
  0x2f   :  { %v444_v25 = vpop.eup %443  ;;  %v178_v10 = vmul.f32 %v424_v21, %v424_v21  ;;  %v426_v31 = vadd.f32 -0.9, %v209_v22  ;;  %v427_v33 = vadd.f32 -0.7, %v231_v23  ;;  %v144_v56 = vlaneseq }
  0x30   :  { %v265_v32 = vmul.f32 %v444_v25, %v542_v28  ;;  %v200_v34 = vmul.f32 %v425_v26, %v425_v26  ;;  %v428_v16 = vadd.f32 -0.9, %v242_v27  ;;  %v276_v35 = vmul.f32 %v444_v25, %v275_v24 }
  0x31   :  { %v211_v38 = vmax.f32 %v426_v31, 0.0  ;;  %449 = vrsqrt.f32 %v365_v30  ;;  %v309_v36 = vmul.f32 %v444_v25, %v308_v29  ;;  %v233_v43 = vmul.f32 %v427_v33, %v427_v33 }
  0x32   :  { %v201_v17 = vadd.f32 %v200_v34, %v178_v10  ;;  %v244_v41 = vmax.f32 %v428_v16, 0.0  ;;  %v429_v44 = vadd.f32 -0.8, %v265_v32  ;;  %v430_v45 = vadd.f32 -0.9, %v276_v35 }
  0x33   :  { %v376_v61 = vand.u32 2147483647, %v375_v51  ;;  %v145_v4 = vshrl.u32 %v144_v56, 7  ;;  %v148_v15 = vand.u32 127, %v144_v56 }
  0x34   :  { %v234_v47 = vadd.f32 %v233_v43, %v201_v17  ;;  %v245_v49 = vadd.f32 %v244_v41, %v211_v38  ;;  %v267_v53 = vmul.f32 %v429_v44, %v429_v44  ;;  %v278_v54 = vmax.f32 %v430_v45, 0.0 }
  0x35   :  { %v146_v14 = vmul.u32 128, %v145_v4 }
  0x36   :  { %v446_v46 = vpop.eup %445  ;;  %v268_v57 = vadd.f32 %v267_v53, %v234_v47  ;;  %v279_v60 = vadd.f32 %v278_v54, %v245_v49 }
  0x37   :  { %v299_v28 = vmul.f32 %v446_v46, %v297_v48  ;;  %v310_v52 = vmul.f32 %v446_v46, %v309_v36  ;;  %v343_v55 = vmul.f32 %v446_v46, %v342_v50  ;;  %v149_v23 = vadd.s32 %v148_v15, %v146_v14 }
  0x39   :  { %v431_v58 = vadd.f32 -0.9, %v299_v28  ;;  %v432_v59 = vadd.f32 -0.9, %v310_v52  ;;  %v448_v42 = vpop.eup %447  ;;  %vm389_vm0 = vcmp.lt.s32.totalorder %v149_v23, 16 }
  0x3a   :  { %v333_v63 = vmul.f32 %v448_v42, %v331_v6  ;;  %v344_v0 = vmul.f32 %v448_v42, %v343_v55  ;;  %v377_v3 = vmul.f32 %v448_v42, %v376_v61 }
  0x3b   :  { %v301_v1 = vmul.f32 %v431_v58, %v431_v58  ;;  %v312_v2 = vmax.f32 %v432_v59, 0.0 }
  0x3c   :  { %v433_v5 = vadd.f32 -1.0, %v333_v63  ;;  %v434_v62 = vadd.f32 -0.9, %v344_v0 }
  0x3d   :  { %v302_v48 = vadd.f32 %v301_v1, %v268_v57  ;;  %v313_v7 = vadd.f32 %v312_v2, %v279_v60 }
  0x3e   :  { %v450_v8 = vpop.eup %449  ;;  %v335_v9 = vmul.f32 %v433_v5, %v433_v5  ;;  %v346_v11 = vmax.f32 %v434_v62, 0.0 }
  0x3f   :  { %v367_v12 = vmul.f32 %v450_v8, %v365_v30  ;;  %v378_v13 = vmul.f32 %v450_v8, %v377_v3 }
  0x40   :  { %v336_v18 = vadd.f32 %v335_v9, %v302_v48  ;;  %v347_v19 = vadd.f32 %v346_v11, %v313_v7 }
  0x41   :  { %v435_v20 = vadd.f32 -1.1, %v367_v12  ;;  %v436_v6 = vadd.f32 -0.9, %v378_v13 }
  0x43   :  { %v369_v21 = vmul.f32 %v435_v20, %v435_v20  ;;  %v380_v22 = vmax.f32 %v436_v6, 0.0 }
  0x45   :  { %v370_v24 = vadd.f32 %v369_v21, %v336_v18  ;;  %v381_v25 = vadd.f32 %v380_v22, %v347_v19 }
  0x47   :  { %v382_v26 = vmul.f32 0.008928572, %v370_v24  ;;  %v383_v27 = vmul.f32 0.0052083335, %v381_v25 }
  0x49   :  { %v384_v29 = vadd.f32 %v383_v27, %v382_v26 }
  0x4b   :  { %v390_v10 = vsel %vm389_vm0, %v384_v29, 0.0 }
  0x4c   :  { %392 = vst [vmem:[%s553_s1] sm:$0xff] %v390_v10 }

</bundles_post_ra>
